<compile_context>
chip_gen: v6e
topology: v6e:2x2x1
jax: 0.10.0
libtpu: 0.0.40
codegen_flags: <defaults>
</compile_context>

<pallas_src>
import functools

import jax
import jax.numpy as jnp
from jax.experimental import pallas as pl
from jax.experimental.pallas import tpu as pltpu

WEIGHT_CONST = 0.11390784328985329
BIAS_CONST = 0.2092717409601135


def _convT_1x1_kernel(x_ref, wt_ref, o_ref, *, bias):
    # x_ref : (nb, Cin,  hw_tile)  NCHW-native pixels, nb batch rows per block
    # wt_ref: (Cout, Cin)          weight already transposed to (Cout, Cin)
    # o_ref : (nb, Cout, hw_tile)
    w = wt_ref[...]
    for n in range(x_ref.shape[0]):  # static unroll over the in-block batch
        acc = jnp.dot(w, x_ref[n], preferred_element_type=jnp.float32)
        o_ref[n] = (acc + bias).astype(o_ref.dtype)


def _tensorcores_per_chip():
    """2 on v7x, 1 on v5e/v6e; defaults to 1 if detection fails."""
    try:
        kind = jax.devices()[0].device_kind.lower()
    except Exception:  # pragma: no cover - CPU/interpret fallbacks
        return 1
    return 2 if ("v7" in kind or "7x" in kind) else 1


def _pick_hw_tile(hw_pad, nb, cin, cout, *, min_blocks=1,
                  max_tile=8192, vmem_budget=12 * 1024 * 1024):
    """Largest multiple of 128 that divides hw_pad, capped by max_tile and a
    double-buffered (input+output block) VMEM budget, while leaving at least
    `min_blocks` grid steps along the H*W axis."""
    n128 = hw_pad // 128
    bytes_per_lane = 2 * nb * (cin + cout) * 4  # double-buffered in+out bytes / lane
    cap = max(1, min(max_tile, vmem_budget // bytes_per_lane) // 128)
    best = 1
    for d in range(1, n128 + 1):
        if n128 % d == 0 and d <= cap and (n128 // d) >= min_blocks:
            best = max(best, d)
    return best * 128


def conv_transpose2d_1x1(x_nchw, weight, bias_val, *,
                         max_tile=8192, vmem_budget=12 * 1024 * 1024):
    """Transposed conv, 1x1 kernel, stride 1, padding 0 (output_padding=0).

    x_nchw : (N, Cin, H, W) float32 (kept in NCHW -- no layout transpose)
    weight : (Cin, Cout, 1, 1)  PyTorch conv_transpose2d weight convention
    bias_val : python float broadcast over the Cout output channels
    returns: (N, Cout, H, W)
    """
    N, Cin, H, W = x_nchw.shape
    Cout = weight.shape[1]
    HW = H * W
    HW_pad = ((HW + 127) // 128) * 128  # lane-dense (multiple-of-128) last dim

    # Free reshape (no data movement): lane dim becomes H*W.
    x3 = x_nchw.reshape(N, Cin, HW)
    if HW_pad != HW:
        # Only triggers for non-128-aligned spatial sizes; keeps stores unmasked
        # and avoids huge full-extent blocks for large odd H*W.
        x3 = jnp.pad(x3, ((0, 0), (0, 0), (0, HW_pad - HW)))

    # Tiny (Cout, Cin) weight so the kernel is a plain row-major matmul.
    wT = jnp.transpose(weight.reshape(Cin, Cout)).astype(jnp.float32)

    cores = _tensorcores_per_chip()
    n128 = HW_pad // 128

    # Fold the whole batch into one block if the double-buffered footprint of
    # even a 128-lane tile fits the budget (it always does for small N).
    fold_batch = (2 * N * (Cin + Cout) * 4 * 128) <= vmem_budget
    nb = N if fold_batch else 1
    nb_blocks = N // nb

    # On 2-TC chips keep >=2 parallel steps along H*W (when batch is folded).
    min_hw_blocks = min(2, n128) if (cores >= 2 and nb_blocks == 1) else 1
    hw_tile = _pick_hw_tile(HW_pad, nb, Cin, Cout, min_blocks=min_hw_blocks,
                            max_tile=max_tile, vmem_budget=vmem_budget)
    num_hw_blocks = HW_pad // hw_tile

    # Grid with degenerate axes dropped.
    if nb_blocks == 1:
        grid = (num_hw_blocks,)
        x_map = lambda s: (0, 0, s)
        w_map = lambda s: (0, 0)
        sem = ("parallel",)
    elif num_hw_blocks == 1:
        grid = (nb_blocks,)
        x_map = lambda b: (b, 0, 0)
        w_map = lambda b: (0, 0)
        sem = ("parallel",)
    else:
        grid = (nb_blocks, num_hw_blocks)
        x_map = lambda b, s: (b, 0, s)
        w_map = lambda b, s: (0, 0)
        sem = ("parallel", "parallel")

    kernel = functools.partial(_convT_1x1_kernel, bias=float(bias_val))

    flops = 2 * N * HW * Cin * Cout
    bytes_accessed = 4 * (N * Cin * HW_pad + Cin * Cout + N * Cout * HW_pad)

    out3 = pl.pallas_call(
        kernel,
        out_shape=jax.ShapeDtypeStruct((N, Cout, HW_pad), jnp.float32),
        grid_spec=pltpu.PrefetchScalarGridSpec(
            num_scalar_prefetch=0,
            grid=grid,
            in_specs=[
                pl.BlockSpec((nb, Cin, hw_tile), x_map),
                pl.BlockSpec((Cout, Cin), w_map),
            ],
            out_specs=pl.BlockSpec((nb, Cout, hw_tile), x_map),
        ),
        compiler_params=pltpu.CompilerParams(
            dimension_semantics=sem,
            vmem_limit_bytes=32 * 1024 * 1024,
        ),
        cost_estimate=pl.CostEstimate(
            flops=flops, transcendentals=0, bytes_accessed=bytes_accessed
        ),
    )(x3, wT)

    if HW_pad != HW:
        out3 = out3[..., :HW]
    # Free reshape back to NCHW.
    return out3.reshape(N, Cout, H, W)


def reference(x_nchw, weight, bias_val):
    # Pure-JAX reference of the same 1x1 transposed conv (channel matmul).
    Cin, Cout = weight.shape[0], weight.shape[1]
    w2d = weight.reshape(Cin, Cout)
    return jnp.einsum("nchw,cd->ndhw", x_nchw, w2d) + bias_val


if __name__ == "__main__":
    key = jax.random.PRNGKey(0)
    # Input to the transposed conv must have Cin = 64 channels
    # (conv.weight is (64, 32, 1, 1) when reused by conv_transpose2d).
    # H = W = 16 -> H*W = 256, so the output lane dim is a multiple of 128.
    N, Cin, Cout, H, W = 2, 64, 32, 16, 16
    x1 = jax.random.normal(key, (N, Cin, H, W), dtype=jnp.float32)

    # Deterministic parameter init matching the module's constant init.
    weight = jnp.full((Cin, Cout, 1, 1), WEIGHT_CONST, dtype=jnp.float32)

    y = conv_transpose2d_1x1(x1, weight, BIAS_CONST)
    y = jax.block_until_ready(y)

    y_ref = reference(x1, weight, BIAS_CONST)
    assert y.shape == (N, Cout, H, W)
    assert jnp.allclose(y, y_ref, atol=1e-5, rtol=1e-5)

    print("KERNEL_OK")
</pallas_src>

<mosaic_0001>
module attributes {stable_mosaic.version = 11 : i64} {
  func.func @_convT_1x1_kernel(%arg0: i32, %arg1: memref<2x64x256xf32, #tpu.memory_space<vmem>>, %arg2: memref<32x64xf32, #tpu.memory_space<vmem>>, %arg3: memref<2x32x256xf32, #tpu.memory_space<vmem>>) attributes {dimension_semantics = [#tpu.dimension_semantics<parallel>], iteration_bounds = array<i64: 1>, scalar_prefetch = 0 : i64, scratch_operands = 0 : i64, tpu.core_type = #tpu.core_type<tc>, window_params = [{transform_indices = @transform_0, window_bounds = array<i64: 2, 64, 256>}, {pipeline_mode = #tpu.pipeline_mode<synchronous>, transform_indices = @transform_1, window_bounds = array<i64: 32, 64>}, {transform_indices = @transform_2, window_bounds = array<i64: 2, 32, 256>}]} {
    %c0 = arith.constant 0 : index
    %c0_0 = arith.constant 0 : index
    %0 = vector.load %arg2[%c0, %c0_0] : memref<32x64xf32, #tpu.memory_space<vmem>>, vector<32x64xf32>
    %c0_1 = arith.constant 0 : index
    %c0_2 = arith.constant 0 : index
    %c0_3 = arith.constant 0 : index
    %1 = vector.load %arg1[%c0_1, %c0_2, %c0_3] : memref<2x64x256xf32, #tpu.memory_space<vmem>>, vector<1x64x256xf32>
    %2 = vector.shape_cast %1 : vector<1x64x256xf32> to vector<64x256xf32>
    %cst = arith.constant dense<0.000000e+00> : vector<32x256xf32>
    %3 = tpu.matmul %0, %2, %cst {dimension_numbers = #tpu.dot_dimension_numbers<[1], [0], [0], [1], [0, 0, 1, 1], [], []>} : vector<32x64xf32>, vector<64x256xf32>, vector<32x256xf32> -> vector<32x256xf32>
    %cst_4 = arith.constant 0.209271744 : f32
    %4 = vector.broadcast %cst_4 : f32 to vector<32x256xf32>
    %5 = arith.addf %3, %4 : vector<32x256xf32>
    %c0_5 = arith.constant 0 : index
    %c0_6 = arith.constant 0 : index
    %c0_7 = arith.constant 0 : index
    %6 = vector.load %arg3[%c0_5, %c0_6, %c0_7] : memref<2x32x256xf32, #tpu.memory_space<vmem>>, vector<1x32x256xf32>
    %7 = vector.shape_cast %6 : vector<1x32x256xf32> to vector<32x256xf32>
    %8 = vector.shape_cast %5 : vector<32x256xf32> to vector<1x32x256xf32>
    tpu.vector_store %arg3[%c0_5, %c0_6, %c0_7], %8 {strides = array<i32>} : memref<2x32x256xf32, #tpu.memory_space<vmem>>, vector<1x32x256xf32>,
    %c1 = arith.constant 1 : index
    %c0_8 = arith.constant 0 : index
    %c0_9 = arith.constant 0 : index
    %9 = vector.load %arg1[%c1, %c0_8, %c0_9] : memref<2x64x256xf32, #tpu.memory_space<vmem>>, vector<1x64x256xf32>
    %10 = vector.shape_cast %9 : vector<1x64x256xf32> to vector<64x256xf32>
    %cst_10 = arith.constant dense<0.000000e+00> : vector<32x256xf32>
    %11 = tpu.matmul %0, %10, %cst_10 {dimension_numbers = #tpu.dot_dimension_numbers<[1], [0], [0], [1], [0, 0, 1, 1], [], []>} : vector<32x64xf32>, vector<64x256xf32>, vector<32x256xf32> -> vector<32x256xf32>
    %cst_11 = arith.constant 0.209271744 : f32
    %12 = vector.broadcast %cst_11 : f32 to vector<32x256xf32>
    %13 = arith.addf %11, %12 : vector<32x256xf32>
    %c1_12 = arith.constant 1 : index
    %c0_13 = arith.constant 0 : index
    %c0_14 = arith.constant 0 : index
    %14 = vector.load %arg3[%c1_12, %c0_13, %c0_14] : memref<2x32x256xf32, #tpu.memory_space<vmem>>, vector<1x32x256xf32>
    %15 = vector.shape_cast %14 : vector<1x32x256xf32> to vector<32x256xf32>
    %16 = vector.shape_cast %13 : vector<32x256xf32> to vector<1x32x256xf32>
    tpu.vector_store %arg3[%c1_12, %c0_13, %c0_14], %16 {strides = array<i32>} : memref<2x32x256xf32, #tpu.memory_space<vmem>>, vector<1x32x256xf32>,
    return
  }
  func.func @transform_0(%arg0: i32) -> (i32, i32, i32) {
    %c0_i32 = arith.constant 0 : i32
    %c0_i32_0 = arith.constant 0 : i32
    %c0_i32_1 = arith.constant 0 : i32
    return %c0_i32, %c0_i32_0, %arg0 : i32, i32, i32
  }
  func.func @transform_1(%arg0: i32) -> (i32, i32) {
    %c0_i32 = arith.constant 0 : i32
    %c0_i32_0 = arith.constant 0 : i32
    %c0_i32_1 = arith.constant 0 : i32
    return %c0_i32, %c0_i32_0 : i32, i32
  }
  func.func @transform_2(%arg0: i32) -> (i32, i32, i32) {
    %c0_i32 = arith.constant 0 : i32
    %c0_i32_0 = arith.constant 0 : i32
    %c0_i32_1 = arith.constant 0 : i32
    return %c0_i32, %c0_i32_0, %arg0 : i32, i32, i32
  }
}

</mosaic_0001>

<bundles_post_ra>
// kernel: tpu_custom_call.1
= control target key start
LH: loop header
LB: loop body
LE: loop exit
PB: predicated region body
PF: predicated region fallthrough
CT: control target
= control target key end

     0   :  { %7 = vsyncpa [#allocation3], 0  ;;  %s439_s0 = inlined_call_operand.hbm [shape: f32[2,64,256], index: 0, kind: input, shape index: {}]   ;;  %s440_s1 = inlined_call_operand.hbm [shape: f32[32,64], index: 1, kind: input, shape index: {}]   ;;  %s441_s2 = inlined_call_operand.hbm [shape: f32[2,32,256], index: 2, kind: output, shape index: {}]  }
   0x1   :  { %8 = vsyncpa [#allocation6], 0 }
   0x2   :  { %9 = vsyncpa [#allocation4], 0  ;;  %s385_s9 = smov [#allocation2]  }
   0x3   :  { %s15_s10 = sshll.u32 %s385_s9, 4  ;;  %s16_s10 = int_to_ptr.vmem [resolvable:$true] %s15_s10 }
   0x4   :  { %s327_s11 = scalar_lea.vmem %s16_s10, 4096  ;;  %p332_p1 = scmp.lt.s32.totalorder %s16_s10, %s16_s10 }
   0x5   :  { %p328_p0 = scmp.ne.s32.totalorder %s16_s10, %s327_s11  ;;  %p333_p2 = scmp.lt.s32.totalorder %s327_s11, %s327_s11 }
   0x7   :  { %p334_p3 = por %p333_p2, %p332_p1 }
   0x9   :  { %p335_p4 = pnand %p334_p3, %p328_p0 }
   0xb   :  { %338 = shalt.err (!%p335_p4)
}
   0xc   :  { %s386_s12 = smov 256   ;;  %s387_s13 = smov 16  }
   0xd   :  { %21 = dma.hbm_to_vmem [thread:$0]  %s439_s0, 4096, %s16_s10, [#allocation3], %s386_s12, %s386_s12, %s387_s13  }
   0xe   :  { %s388_s16 = smov [#allocation5]  }
   0xf   :  { %s27_s17 = sshll.u32 %s388_s16, 4  ;;  %s28_s17 = int_to_ptr.vmem [resolvable:$true] %s27_s17 }
  0x10   :  { %s347_s18 = scalar_lea.vmem %s28_s17, 512  ;;  %p352_p6 = scmp.lt.s32.totalorder %s28_s17, %s28_s17 }
  0x11   :  { %p348_p5 = scmp.ne.s32.totalorder %s28_s17, %s347_s18  ;;  %p353_p7 = scmp.lt.s32.totalorder %s347_s18, %s347_s18 }
  0x13   :  { %p354_p8 = por %p353_p7, %p352_p6 }
  0x15   :  { %p355_p9 = pnand %p354_p8, %p348_p5 }
  0x17   :  { %358 = shalt.err (!%p355_p9)
}
  0x18   :  { %s389_s19 = smov 128   ;;  %s390_s20 = smov 8  }
  0x19   :  { %33 = dma.hbm_to_vmem [thread:$0]  %s440_s1, 512, %s28_s17, [#allocation6], %s389_s19, %s389_s19, %s390_s20  }
  0x1a   :  { %379 = dma.done.wait [#allocation3], 4096  }
  0x1b   :  { %380 = vsyncadd [#allocation3], 4294963200 }
  0x1c   :  { %381 = dma.done.wait [#allocation6], 512  }
  0x1d   :  { %382 = vsyncadd [#allocation6], 4294966784  ;;  %v391_v0 = vmov 0.0   ;;  %v59_v1 = vld [vmem:[#allocation2 + $0x78] sm:$0xff]  ;;  %v58_v3 = vld [vmem:[#allocation2 + $0x70] sm:$0xff]  ;;  %vm60_vm0 = vcmask 523264  }
  0x1e   :  { %137 = vmatprep.mubr.f32.mxu0 %v391_v0  ;;  %251 = vmatprep.mubr.f32.mxu1 %v391_v0  ;;  %v186_v2 = vld [vmem:[#allocation2 + $0xf8] sm:$0xff]  ;;  %v185_v4 = vld [vmem:[#allocation2 + $0xf0] sm:$0xff]  ;;  %v57_v5 = vld [vmem:[#allocation2 + $0x68] sm:$0xff]  ;;  %s392_s0 = smov [#allocation7]  }
  0x1f   :  { %89 = vmatprep.subr.mxu0 %v59_v1  ;;  %203 = vmatprep.subr.mxu1 %v186_v2  ;;  %v184_v6 = vld [vmem:[#allocation2 + $0xe8] sm:$0xff]  ;;  %v56_v7 = vld [vmem:[#allocation2 + $0x60] sm:$0xff]  ;;  %v55_v9 = vld [vmem:[#allocation2 + $0x58] sm:$0xff]  ;;  %s290_s1 = sshll.u32 %s392_s0, 4  ;;  %s291_s1 = int_to_ptr.vmem [resolvable:$true] %s290_s1 }
  0x20   :  { %90 = vmatpush1.msra.mxu0 %v58_v3  ;;  %204 = vmatpush1.msra.mxu1 %v185_v4  ;;  %v183_v8 = vld [vmem:[#allocation2 + $0xe0] sm:$0xff]  ;;  %v182_v10 = vld [vmem:[#allocation2 + $0xd8] sm:$0xff]  ;;  %v54_v11 = vld [vmem:[#allocation2 + $0x50] sm:$0xff]  ;;  %s359_s23 = scalar_lea.vmem %s291_s1, 2048  ;;  %p364_p11 = scmp.lt.s32.totalorder %s291_s1, %s291_s1 }
  0x21   :  { %91 = vmatprep.subr.mxu0 %v57_v5  ;;  %205 = vmatprep.subr.mxu1 %v184_v6  ;;  %v181_v12 = vld [vmem:[#allocation2 + $0xd0] sm:$0xff]  ;;  %v53_v13 = vld [vmem:[#allocation2 + $0x48] sm:$0xff]  ;;  %v52_v15 = vld [vmem:[#allocation2 + $0x40] sm:$0xff]  ;;  %p360_p10 = scmp.ne.s32.totalorder %s291_s1, %s359_s23  ;;  %p365_p12 = scmp.lt.s32.totalorder %s359_s23, %s359_s23 }
  0x22   :  { %92 = vmatpush1.msra.mxu0 %v56_v7  ;;  %206 = vmatpush1.msra.mxu1 %v183_v8  ;;  %v180_v14 = vld [vmem:[#allocation2 + $0xc8] sm:$0xff]  ;;  %v179_v16 = vld [vmem:[#allocation2 + $0xc0] sm:$0xff]  ;;  %v51_v17 = vld [vmem:[#allocation2 + $0x38] sm:$0xff] }
  0x23   :  { %93 = vmatprep.subr.mxu0 %v55_v9  ;;  %207 = vmatprep.subr.mxu1 %v182_v10  ;;  %v178_v18 = vld [vmem:[#allocation2 + $0xb8] sm:$0xff]  ;;  %v50_v19 = vld [vmem:[#allocation2 + $0x30] sm:$0xff]  ;;  %v49_v21 = vld [vmem:[#allocation2 + $0x28] sm:$0xff]  ;;  %p366_p13 = por %p365_p12, %p364_p11 }
  0x24   :  { %94 = vmatpush1.msra.mxu0 %v54_v11  ;;  %208 = vmatpush1.msra.mxu1 %v181_v12  ;;  %v177_v20 = vld [vmem:[#allocation2 + $0xb0] sm:$0xff]  ;;  %v176_v22 = vld [vmem:[#allocation2 + $0xa8] sm:$0xff]  ;;  %v48_v23 = vld [vmem:[#allocation2 + $0x20] sm:$0xff] }
  0x25   :  { %95 = vmatprep.subr.mxu0 %v53_v13  ;;  %209 = vmatprep.subr.mxu1 %v180_v14  ;;  %v175_v24 = vld [vmem:[#allocation2 + $0xa0] sm:$0xff]  ;;  %v47_v25 = vld [vmem:[#allocation2 + $0x18] sm:$0xff]  ;;  %v46_v27 = vld [vmem:[#allocation2 + $0x10] sm:$0xff]  ;;  %p367_p0 = pnand %p366_p13, %p360_p10 }
  0x26   :  { %96 = vmatpush1.msra.mxu0 %v52_v15  ;;  %210 = vmatpush1.msra.mxu1 %v179_v16  ;;  %v174_v26 = vld [vmem:[#allocation2 + $0x98] sm:$0xff]  ;;  %v173_v28 = vld [vmem:[#allocation2 + $0x90] sm:$0xff]  ;;  %v45_v29 = vld [vmem:[#allocation2 + $0x8] sm:$0xff] }
  0x27   :  { %97 = vmatprep.subr.mxu0 %v51_v17  ;;  %211 = vmatprep.subr.mxu1 %v178_v18  ;;  %v172_v30 = vld [vmem:[#allocation2 + $0x88] sm:$0xff]  ;;  %v44_v31 = vld [vmem:[#allocation2] sm:$0xff]  ;;  %v42_v35 = vld [vmem:[#allocation5 + $0x10] sm:$0xff] }
  0x28   :  { %98 = vmatpush1.msra.mxu0 %v50_v19  ;;  %212 = vmatpush1.msra.mxu1 %v177_v20  ;;  %v171_v32 = vld [vmem:[#allocation2 + $0x80] sm:$0xff]  ;;  %v41_v34 = vld [vmem:[#allocation5 + $0x8] sm:$0xff]  ;;  %v43_v36 = vld [vmem:[#allocation5 + $0x18] sm:$0xff] }
  0x29   :  { %99 = vmatprep.subr.mxu0 %v49_v21  ;;  %213 = vmatprep.subr.mxu1 %v176_v22  ;;  %v40_v33 = vld [vmem:[#allocation5] sm:$0xff] }
  0x2a   :  { %100 = vmatpush1.msra.mxu0 %v48_v23  ;;  %214 = vmatpush1.msra.mxu1 %v175_v24 }
  0x2b   :  { %101 = vmatprep.subr.mxu0 %v47_v25  ;;  %215 = vmatprep.subr.mxu1 %v174_v26 }
  0x2c   :  { %102 = vmatpush1.msra.mxu0 %v46_v27  ;;  %216 = vmatpush1.msra.mxu1 %v173_v28 }
  0x2d   :  { %103 = vmatprep.subr.mxu0 %v45_v29  ;;  %217 = vmatprep.subr.mxu1 %v172_v30 }
  0x2e   :  { %104 = vmatpush1.msra.mxu0 %v44_v31  ;;  %218 = vmatpush1.msra.mxu1 %v171_v32 }
  0x2f   :  { %303 = vmatmul.mubr.msk.f32.vlgmr.msra.gmra.mxu0 %vm60_vm0, %v40_v33  ;;  %307 = vmatmul.mubr.msk.f32.vlgmr.msra.gmra.mxu1 %vm60_vm0, %v40_v33 }
  0x30   :  { %143 = vmatprep.mubr.f32.mxu0 %v391_v0  ;;  %257 = vmatprep.mubr.f32.mxu1 %v391_v0 }
  0x33   :  { %304 = vmatmul.mubr.msk.f32.gmra.mxu0 %vm60_vm0, %v41_v34  ;;  %308 = vmatmul.mubr.msk.f32.gmra.mxu1 %vm60_vm0, %v41_v34 }
  0x34   :  { %149 = vmatprep.mubr.f32.mxu0 %v391_v0  ;;  %263 = vmatprep.mubr.f32.mxu1 %v391_v0 }
  0x37   :  { %305 = vmatmul.mubr.msk.f32.gmra.mxu0 %vm60_vm0, %v42_v35  ;;  %309 = vmatmul.mubr.msk.f32.gmra.mxu1 %vm60_vm0, %v42_v35 }
  0x38   :  { %155 = vmatprep.mubr.f32.mxu0 %v391_v0  ;;  %269 = vmatprep.mubr.f32.mxu1 %v391_v0 }
  0x3b   :  { %306 = vmatmul.mubr.msk.f32.gmra.mxu0 %vm60_vm0, %v43_v36  ;;  %310 = vmatmul.mubr.msk.f32.gmra.mxu1 %vm60_vm0, %v43_v36 }
  0xef   :  { %v139_v37 = vpop.f32.mrf.mxu0  ;;  %v253_v38 = vpop.f32.mrf.mxu1 }
  0xf0   :  { %v140_v39 = vadd.f32 0.20927174, %v139_v37  ;;  %v254_v40 = vadd.f32 0.20927174, %v253_v38 }
  0xf1   :  { %v141_v41 = vpop.f32.mrf.mxu0  ;;  %v255_v42 = vpop.f32.mrf.mxu1 }
  0xf2   :  { %162 = vst [vmem:[#allocation7] sm:$0xff] %v140_v39  ;;  %277 = vst [vmem:[#allocation7 + $0x40] sm:$0xff] %v254_v40  ;;  %v142_v43 = vadd.f32 0.20927174, %v141_v41  ;;  %v256_v44 = vadd.f32 0.20927174, %v255_v42 }
  0xf3   :  { %v145_v45 = vpop.f32.mrf.mxu0  ;;  %v259_v46 = vpop.f32.mrf.mxu1 }
  0xf4   :  { %163 = vst [vmem:[#allocation7 + $0x8] sm:$0xff] %v142_v43  ;;  %278 = vst [vmem:[#allocation7 + $0x48] sm:$0xff] %v256_v44  ;;  %v146_v47 = vadd.f32 0.20927174, %v145_v45  ;;  %v260_v48 = vadd.f32 0.20927174, %v259_v46 }
  0xf5   :  { %v147_v49 = vpop.f32.mrf.mxu0  ;;  %v261_v50 = vpop.f32.mrf.mxu1 }
  0xf6   :  { %164 = vst [vmem:[#allocation7 + $0x10] sm:$0xff] %v146_v47  ;;  %279 = vst [vmem:[#allocation7 + $0x50] sm:$0xff] %v260_v48  ;;  %v148_v51 = vadd.f32 0.20927174, %v147_v49  ;;  %v262_v52 = vadd.f32 0.20927174, %v261_v50 }
  0xf7   :  { %v151_v53 = vpop.f32.mrf.mxu0  ;;  %v265_v54 = vpop.f32.mrf.mxu1 }
  0xf8   :  { %165 = vst [vmem:[#allocation7 + $0x18] sm:$0xff] %v148_v51  ;;  %280 = vst [vmem:[#allocation7 + $0x58] sm:$0xff] %v262_v52  ;;  %v152_v55 = vadd.f32 0.20927174, %v151_v53  ;;  %v266_v56 = vadd.f32 0.20927174, %v265_v54 }
  0xf9   :  { %v153_v57 = vpop.f32.mrf.mxu0  ;;  %v267_v58 = vpop.f32.mrf.mxu1 }
  0xfa   :  { %166 = vst [vmem:[#allocation7 + $0x20] sm:$0xff] %v152_v55  ;;  %281 = vst [vmem:[#allocation7 + $0x60] sm:$0xff] %v266_v56  ;;  %v154_v59 = vadd.f32 0.20927174, %v153_v57  ;;  %v268_v60 = vadd.f32 0.20927174, %v267_v58 }
  0xfb   :  { %v157_v61 = vpop.f32.mrf.mxu0  ;;  %v271_v62 = vpop.f32.mrf.mxu1 }
  0xfc   :  { %167 = vst [vmem:[#allocation7 + $0x28] sm:$0xff] %v154_v59  ;;  %282 = vst [vmem:[#allocation7 + $0x68] sm:$0xff] %v268_v60  ;;  %v158_v63 = vadd.f32 0.20927174, %v157_v61  ;;  %v272_v0 = vadd.f32 0.20927174, %v271_v62 }
  0xfd   :  { %v159_v1 = vpop.f32.mrf.mxu0  ;;  %v273_v2 = vpop.f32.mrf.mxu1 }
  0xfe   :  { %168 = vst [vmem:[#allocation7 + $0x30] sm:$0xff] %v158_v63  ;;  %283 = vst [vmem:[#allocation7 + $0x70] sm:$0xff] %v272_v0  ;;  %v160_v3 = vadd.f32 0.20927174, %v159_v1  ;;  %v274_v4 = vadd.f32 0.20927174, %v273_v2 }
 0x100   :  { %169 = vst [vmem:[#allocation7 + $0x38] sm:$0xff] %v160_v3  ;;  %284 = vst [vmem:[#allocation7 + $0x78] sm:$0xff] %v274_v4 }
 0x101   :  { %370 = shalt.err (!%p367_p0)
}
 0x102   :  { %296 = dma.vmem_to_hbm [thread:$0]  %s291_s1, 2048, %s441_s2, [#allocation4], %s386_s12, %s386_s12, %s387_s13  }
 0x103   :  { %383 = dma.done.wait [#allocation4], 2048  }
 0x104   :  { %384 = vsyncadd [#allocation4], 4294965248 }
 0x105   :  { %300 = vsyncpa [#allocation3], 1 }
 0x106   :  { %301 = vsyncpa [#allocation6], 1 }
 0x107   :  { %302 = vsyncpa [#allocation4], 1 }

</bundles_post_ra>
